<compile_context>
chip_gen: v6e
topology: v6e:2x2x1
jax: 0.10.0
libtpu: 0.0.40
codegen_flags: <defaults>
</compile_context>

<pallas_src>
import functools

import jax
import jax.numpy as jnp
from jax import lax
from jax.experimental import pallas as pl
from jax.experimental.pallas import tpu as pltpu

LOG_SIG_MAX = 2.0
LOG_SIG_MIN = -20.0


def _round_up(x, m):
    return (x + m - 1) // m * m


def _gaussian_policy_kernel(
    state_ref,            # (TB, D_in)
    w1_ref, b1_ref,       # (D_in, H), (1, H)
    w2_ref, b2_ref,       # (H, H),    (1, H)
    wh_ref, bh_ref,       # (H, P),    (1, P)   fused heads [mean | log_std | pad]
    out_ref,              # (TB, P)    lane-dense fused output
    *, num_actions, matmul_dtype,
):
    x = state_ref[...].astype(matmul_dtype)

    # body: Linear -> ReLU -> Linear -> ReLU (bf16 MXU inputs, f32 accumulate,
    # elementwise math in f32).
    h1 = jnp.dot(x, w1_ref[...].astype(matmul_dtype),
                 preferred_element_type=jnp.float32) + b1_ref[...]
    h1 = jnp.maximum(h1, 0.0).astype(matmul_dtype)
    h2 = jnp.dot(h1, w2_ref[...].astype(matmul_dtype),
                 preferred_element_type=jnp.float32) + b2_ref[...]
    h2 = jnp.maximum(h2, 0.0).astype(matmul_dtype)

    # fused heads: one lane-dense matmul producing [mean | log_std | pad].
    heads = jnp.dot(h2, wh_ref[...].astype(matmul_dtype),
                    preferred_element_type=jnp.float32) + bh_ref[...]

    # clamp only the log_std columns [A, 2A) via a lane-index mask (VPU-only).
    col = lax.broadcasted_iota(jnp.int32, heads.shape, 1)
    is_log_std = (col >= num_actions) & (col < 2 * num_actions)
    clipped = jnp.clip(heads, LOG_SIG_MIN, LOG_SIG_MAX)
    out_ref[...] = jnp.where(is_log_std, clipped, heads).astype(out_ref.dtype)


def gaussian_policy_forward(state, params, *, matmul_dtype=jnp.bfloat16,
                            max_batch_tile=512):
    """Fused forward pass. state: (B, D_in) float32. Returns (mean, log_std)."""
    assert max_batch_tile % 8 == 0
    B, D_in = state.shape
    H = params["w1"].shape[1]
    A = params["wm"].shape[1]
    P = _round_up(max(2 * A, 128), 128)        # lane-dense fused head width

    # Pack + zero-pad the two heads into one (H, P) weight / (1, P) bias.
    wh = (jnp.zeros((H, P), jnp.float32)
          .at[:, :A].set(params["wm"])
          .at[:, A:2 * A].set(params["wl"]))
    bh = (jnp.zeros((1, P), jnp.float32)
          .at[:, :A].set(params["bm"])
          .at[:, A:2 * A].set(params["bl"]))

    # Batch tiling: multiple-of-8 tiles, pad batch to a whole number of tiles.
    TB = min(max_batch_tile, _round_up(B, 8))
    B_pad = _round_up(B, TB)
    if B_pad != B:
        state = jnp.pad(state, ((0, B_pad - B), (0, 0)))
    grid = (B_pad // TB,)

    const = lambda i: (0, 0)                   # weights stay resident across steps
    kernel = functools.partial(_gaussian_policy_kernel,
                               num_actions=A, matmul_dtype=matmul_dtype)

    # VMEM budget: double-buffered state + output tiles, resident weights, headroom.
    tile_bytes = 4 * (2 * TB * D_in + 2 * TB * P)
    weight_bytes = 4 * (D_in * H + H * H + H * P + 2 * H + P)
    vmem_limit = min(48 << 20, max(16 << 20, 4 * (tile_bytes + weight_bytes)))

    out = pl.pallas_call(
        kernel,
        out_shape=jax.ShapeDtypeStruct((B_pad, P), jnp.float32),
        grid=grid,
        in_specs=[
            pl.BlockSpec((TB, D_in), lambda i: (i, 0)),
            pl.BlockSpec((D_in, H), const), pl.BlockSpec((1, H), const),
            pl.BlockSpec((H, H), const),    pl.BlockSpec((1, H), const),
            pl.BlockSpec((H, P), const),    pl.BlockSpec((1, P), const),
        ],
        out_specs=pl.BlockSpec((TB, P), lambda i: (i, 0)),
        compiler_params=pltpu.CompilerParams(
            dimension_semantics=("parallel",),
            vmem_limit_bytes=vmem_limit),
    )(state, params["w1"], params["b1"], params["w2"], params["b2"], wh, bh)

    mean = out[:B, :A]
    log_std = out[:B, A:2 * A]
    return mean, log_std


def init_params(key, input_dim, hidden_dim, num_actions):
    """Deterministic (xavier-uniform-like) init, weights stored (in, out)."""
    ks = jax.random.split(key, 4)

    def xavier(k, fan_in, fan_out):
        limit = jnp.sqrt(6.0 / (fan_in + fan_out))
        return jax.random.uniform(k, (fan_in, fan_out), jnp.float32, -limit, limit)

    return {
        "w1": xavier(ks[0], input_dim, hidden_dim),
        "b1": jnp.zeros((1, hidden_dim), jnp.float32),
        "w2": xavier(ks[1], hidden_dim, hidden_dim),
        "b2": jnp.zeros((1, hidden_dim), jnp.float32),
        "wm": xavier(ks[2], hidden_dim, num_actions),
        "bm": jnp.zeros((1, num_actions), jnp.float32),
        "wl": xavier(ks[3], hidden_dim, num_actions),
        "bl": jnp.zeros((1, num_actions), jnp.float32),
    }


def reference_forward(state, p):
    """Pure-JAX f32 reference matching the torch forward semantics."""
    h = jnp.maximum(state @ p["w1"] + p["b1"], 0.0)
    h = jnp.maximum(h @ p["w2"] + p["b2"], 0.0)
    mean = h @ p["wm"] + p["bm"]
    log_std = jnp.clip(h @ p["wl"] + p["bl"], LOG_SIG_MIN, LOG_SIG_MAX)
    return mean, log_std


if __name__ == "__main__":
    # TODO(synk): 'cnn' model_type (Conv2d stack) not implemented; this covers model_type='mlp'.
    B, D_IN, HIDDEN, N_ACTIONS = 8, 16, 32, 8

    key = jax.random.PRNGKey(0)
    k_state, k_params = jax.random.split(key)
    state = jax.random.normal(k_state, (B, D_IN), jnp.float32)
    params = init_params(k_params, D_IN, HIDDEN, N_ACTIONS)

    fwd_f32 = jax.jit(functools.partial(gaussian_policy_forward,
                                        matmul_dtype=jnp.float32))
    fwd_bf16 = jax.jit(functools.partial(gaussian_policy_forward,
                                         matmul_dtype=jnp.bfloat16))

    mean_ref, log_std_ref = reference_forward(state, params)

    # Exact-math path (f32 MXU inputs) checks the structural changes
    # (head fusion, lane padding, clamp mask, grid) against the reference.
    mean32, log_std32 = fwd_f32(state, params)
    jax.block_until_ready((mean32, log_std32))
    assert mean32.shape == (B, N_ACTIONS) and log_std32.shape == (B, N_ACTIONS)
    assert jnp.allclose(mean32, mean_ref, atol=1e-5, rtol=1e-5)
    assert jnp.allclose(log_std32, log_std_ref, atol=1e-5, rtol=1e-5)

    # Default fast path (bf16 MXU inputs, f32 accumulation): loose tolerance.
    mean, log_std = fwd_bf16(state, params)
    jax.block_until_ready((mean, log_std))
    assert jnp.allclose(mean, mean_ref, atol=5e-2, rtol=5e-2)
    assert jnp.allclose(log_std, log_std_ref, atol=5e-2, rtol=5e-2)
    assert float(log_std.max()) <= LOG_SIG_MAX and float(log_std.min()) >= LOG_SIG_MIN

    # Exercise multi-step grid + batch padding (B=20 -> padded to 24, 3 tiles of 8).
    state2 = jax.random.normal(jax.random.PRNGKey(1), (20, D_IN), jnp.float32)
    m2, l2 = gaussian_policy_forward(state2, params, matmul_dtype=jnp.float32,
                                     max_batch_tile=8)
    jax.block_until_ready((m2, l2))
    m2_ref, l2_ref = reference_forward(state2, params)
    assert m2.shape == (20, N_ACTIONS) and l2.shape == (20, N_ACTIONS)
    assert jnp.allclose(m2, m2_ref, atol=1e-5, rtol=1e-5)
    assert jnp.allclose(l2, l2_ref, atol=1e-5, rtol=1e-5)

    print("KERNEL_OK")
</pallas_src>

<mosaic_0001>
module attributes {stable_mosaic.version = 11 : i64} {
  func.func @_gaussian_policy_kernel(%arg0: i32, %arg1: memref<8x16xf32, #tpu.memory_space<vmem>>, %arg2: memref<16x32xf32, #tpu.memory_space<vmem>>, %arg3: memref<1x32xf32, #tpu.memory_space<vmem>>, %arg4: memref<32x32xf32, #tpu.memory_space<vmem>>, %arg5: memref<1x32xf32, #tpu.memory_space<vmem>>, %arg6: memref<32x128xf32, #tpu.memory_space<vmem>>, %arg7: memref<1x128xf32, #tpu.memory_space<vmem>>, %arg8: memref<8x128xf32, #tpu.memory_space<vmem>>) attributes {dimension_semantics = [#tpu.dimension_semantics<parallel>], iteration_bounds = array<i64: 1>, scalar_prefetch = 0 : i64, scratch_operands = 0 : i64, tpu.core_type = #tpu.core_type<tc>, window_params = [{transform_indices = @transform_0, window_bounds = array<i64: 8, 16>}, {pipeline_mode = #tpu.pipeline_mode<synchronous>, transform_indices = @transform_1, window_bounds = array<i64: 16, 32>}, {pipeline_mode = #tpu.pipeline_mode<synchronous>, transform_indices = @transform_2, window_bounds = array<i64: 1, 32>}, {pipeline_mode = #tpu.pipeline_mode<synchronous>, transform_indices = @transform_3, window_bounds = array<i64: 32, 32>}, {pipeline_mode = #tpu.pipeline_mode<synchronous>, transform_indices = @transform_4, window_bounds = array<i64: 1, 32>}, {pipeline_mode = #tpu.pipeline_mode<synchronous>, transform_indices = @transform_5, window_bounds = array<i64: 32, 128>}, {pipeline_mode = #tpu.pipeline_mode<synchronous>, transform_indices = @transform_6, window_bounds = array<i64: 1, 128>}, {transform_indices = @transform_7, window_bounds = array<i64: 8, 128>}]} {
    %c0 = arith.constant 0 : index
    %c0_0 = arith.constant 0 : index
    %0 = vector.load %arg1[%c0, %c0_0] : memref<8x16xf32, #tpu.memory_space<vmem>>, vector<8x16xf32>
    %c0_1 = arith.constant 0 : index
    %c0_2 = arith.constant 0 : index
    %1 = vector.load %arg2[%c0_1, %c0_2] : memref<16x32xf32, #tpu.memory_space<vmem>>, vector<16x32xf32>
    %cst = arith.constant dense<0.000000e+00> : vector<8x32xf32>
    %2 = tpu.matmul %0, %1, %cst {dimension_numbers = #tpu.dot_dimension_numbers<[1], [0], [0], [1], [0, 0, 1, 1], [], []>} : vector<8x16xf32>, vector<16x32xf32>, vector<8x32xf32> -> vector<8x32xf32>
    %c0_3 = arith.constant 0 : index
    %c0_4 = arith.constant 0 : index
    %3 = vector.load %arg3[%c0_3, %c0_4] : memref<1x32xf32, #tpu.memory_space<vmem>>, vector<1x32xf32>
    %4 = vector.broadcast %3 : vector<1x32xf32> to vector<8x32xf32>
    %5 = arith.addf %2, %4 : vector<8x32xf32>
    %cst_5 = arith.constant 0.000000e+00 : f32
    %6 = vector.broadcast %cst_5 : f32 to vector<8x32xf32>
    %7 = arith.maximumf %5, %6 : vector<8x32xf32>
    %c0_6 = arith.constant 0 : index
    %c0_7 = arith.constant 0 : index
    %8 = vector.load %arg4[%c0_6, %c0_7] : memref<32x32xf32, #tpu.memory_space<vmem>>, vector<32x32xf32>
    %cst_8 = arith.constant dense<0.000000e+00> : vector<8x32xf32>
    %9 = tpu.matmul %7, %8, %cst_8 {dimension_numbers = #tpu.dot_dimension_numbers<[1], [0], [0], [1], [0, 0, 1, 1], [], []>} : vector<8x32xf32>, vector<32x32xf32>, vector<8x32xf32> -> vector<8x32xf32>
    %c0_9 = arith.constant 0 : index
    %c0_10 = arith.constant 0 : index
    %10 = vector.load %arg5[%c0_9, %c0_10] : memref<1x32xf32, #tpu.memory_space<vmem>>, vector<1x32xf32>
    %11 = vector.broadcast %10 : vector<1x32xf32> to vector<8x32xf32>
    %12 = arith.addf %9, %11 : vector<8x32xf32>
    %cst_11 = arith.constant 0.000000e+00 : f32
    %13 = vector.broadcast %cst_11 : f32 to vector<8x32xf32>
    %14 = arith.maximumf %12, %13 : vector<8x32xf32>
    %c0_12 = arith.constant 0 : index
    %c0_13 = arith.constant 0 : index
    %15 = vector.load %arg6[%c0_12, %c0_13] : memref<32x128xf32, #tpu.memory_space<vmem>>, vector<32x128xf32>
    %cst_14 = arith.constant dense<0.000000e+00> : vector<8x128xf32>
    %16 = tpu.matmul %14, %15, %cst_14 {dimension_numbers = #tpu.dot_dimension_numbers<[1], [0], [0], [1], [0, 0, 1, 1], [], []>} : vector<8x32xf32>, vector<32x128xf32>, vector<8x128xf32> -> vector<8x128xf32>
    %c0_15 = arith.constant 0 : index
    %c0_16 = arith.constant 0 : index
    %17 = vector.load %arg7[%c0_15, %c0_16] : memref<1x128xf32, #tpu.memory_space<vmem>>, vector<1x128xf32>
    %18 = vector.broadcast %17 : vector<1x128xf32> to vector<8x128xf32>
    %19 = arith.addf %16, %18 : vector<8x128xf32>
    %20 = tpu.iota {dimensions = array<i32: 1>} : vector<8x128xi32>
    %c8_i32 = arith.constant 8 : i32
    %21 = vector.broadcast %c8_i32 : i32 to vector<8x128xi32>
    %22 = arith.cmpi sge, %20, %21 : vector<8x128xi32>
    %c16_i32 = arith.constant 16 : i32
    %23 = vector.broadcast %c16_i32 : i32 to vector<8x128xi32>
    %24 = arith.cmpi slt, %20, %23 : vector<8x128xi32>
    %25 = arith.andi %22, %24 : vector<8x128xi1>
    %cst_17 = arith.constant -2.000000e+01 : f32
    %cst_18 = arith.constant 2.000000e+00 : f32
    %26 = vector.broadcast %cst_17 : f32 to vector<8x128xf32>
    %27 = arith.maximumf %26, %19 : vector<8x128xf32>
    %28 = vector.broadcast %cst_18 : f32 to vector<8x128xf32>
    %29 = arith.minimumf %28, %27 : vector<8x128xf32>
    %30 = arith.select %25, %29, %19 : vector<8x128xi1>, vector<8x128xf32>
    %c0_19 = arith.constant 0 : index
    %c0_20 = arith.constant 0 : index
    %31 = vector.load %arg8[%c0_19, %c0_20] : memref<8x128xf32, #tpu.memory_space<vmem>>, vector<8x128xf32>
    tpu.vector_store %arg8[%c0_19, %c0_20], %30 {strides = array<i32>} : memref<8x128xf32, #tpu.memory_space<vmem>>, vector<8x128xf32>,
    return
  }
  func.func @transform_0(%arg0: i32) -> (i32, i32) {
    %c0_i32 = arith.constant 0 : i32
    %c0_i32_0 = arith.constant 0 : i32
    return %arg0, %c0_i32 : i32, i32
  }
  func.func @transform_1(%arg0: i32) -> (i32, i32) {
    %c0_i32 = arith.constant 0 : i32
    %c0_i32_0 = arith.constant 0 : i32
    %c0_i32_1 = arith.constant 0 : i32
    return %c0_i32, %c0_i32_0 : i32, i32
  }
  func.func @transform_2(%arg0: i32) -> (i32, i32) {
    %c0_i32 = arith.constant 0 : i32
    %c0_i32_0 = arith.constant 0 : i32
    %c0_i32_1 = arith.constant 0 : i32
    return %c0_i32, %c0_i32_0 : i32, i32
  }
  func.func @transform_3(%arg0: i32) -> (i32, i32) {
    %c0_i32 = arith.constant 0 : i32
    %c0_i32_0 = arith.constant 0 : i32
    %c0_i32_1 = arith.constant 0 : i32
    return %c0_i32, %c0_i32_0 : i32, i32
  }
  func.func @transform_4(%arg0: i32) -> (i32, i32) {
    %c0_i32 = arith.constant 0 : i32
    %c0_i32_0 = arith.constant 0 : i32
    %c0_i32_1 = arith.constant 0 : i32
    return %c0_i32, %c0_i32_0 : i32, i32
  }
  func.func @transform_5(%arg0: i32) -> (i32, i32) {
    %c0_i32 = arith.constant 0 : i32
    %c0_i32_0 = arith.constant 0 : i32
    %c0_i32_1 = arith.constant 0 : i32
    return %c0_i32, %c0_i32_0 : i32, i32
  }
  func.func @transform_6(%arg0: i32) -> (i32, i32) {
    %c0_i32 = arith.constant 0 : i32
    %c0_i32_0 = arith.constant 0 : i32
    %c0_i32_1 = arith.constant 0 : i32
    return %c0_i32, %c0_i32_0 : i32, i32
  }
  func.func @transform_7(%arg0: i32) -> (i32, i32) {
    %c0_i32 = arith.constant 0 : i32
    %c0_i32_0 = arith.constant 0 : i32
    return %arg0, %c0_i32 : i32, i32
  }
}

</mosaic_0001>

<bundles_post_ra>
// kernel: gaussian_policy_forward.1
= control target key start
LH: loop header
LB: loop body
LE: loop exit
PB: predicated region body
PF: predicated region fallthrough
CT: control target
= control target key end

     0   :  { %v344_v0 = vmov 0.0   ;;  %vm345_vm0 = vmmov 0   ;;  %vm36_vm1 = vcmask 130048   ;;  %vm122_vm2 = vcmask 261120   ;;  %s433_s1 = inlined_call_operand.vmem [shape: f32[16,32], index: 1, kind: input, shape index: {}]   ;;  %s434_s0 = inlined_call_operand.vmem [shape: f32[8,16], index: 0, kind: input, shape index: {}]   ;;  %s435_s3 = inlined_call_operand.vmem [shape: f32[32,32], index: 3, kind: input, shape index: {}]   ;;  %s436_s5 = inlined_call_operand.vmem [shape: f32[32,128], index: 5, kind: input, shape index: {}]   ;;  %s437_s2 = inlined_call_operand.vmem [shape: f32[1,32], index: 2, kind: input, shape index: {}]   ;;  %s438_s4 = inlined_call_operand.vmem [shape: f32[1,32], index: 4, kind: input, shape index: {}]   ;;  %s439_s6 = inlined_call_operand.vmem [shape: f32[1,128], index: 6, kind: input, shape index: {}]   ;;  %s440_s7 = inlined_call_operand.vmem [shape: f32[8,128], index: 7, kind: output, shape index: {}]  }
   0x1   :  { %313 = vmatprep.subr.mxu0 %v344_v0  ;;  %v28_v1 = vld [vmem:[%s433_s1 + $0x8] sm:$0xff]  ;;  %v27_v2 = vld [vmem:[%s433_s1] sm:$0xff]  ;;  %317 = vmatprep.mubr.msk.f32.mxu0 %vm345_vm0, %v344_v0  ;;  %v114_v4 = vld [vmem:[%s435_s3 + $0x18] sm:$0xff]  ;;  %v281_v22 = vlaneseq }
   0x2   :  { %314 = vmatpush3.msra.mxu0 %v28_v1  ;;  %v26_v3 = vld [vmem:[%s434_s0] sm:$0xff]  ;;  %320 = vmatprep.subr.mxu1 %v344_v0  ;;  %v113_v5 = vld [vmem:[%s435_s3 + $0x10] sm:$0xff]  ;;  %v112_v6 = vld [vmem:[%s435_s3 + $0x8] sm:$0xff] }
   0x3   :  { %315 = vmatprep.subr.mxu0 %v344_v0  ;;  %321 = vmatpush3.msra.mxu1 %v114_v4  ;;  %v111_v7 = vld [vmem:[%s435_s3] sm:$0xff]  ;;  %v200_v8 = vld [vmem:[%s436_s5 + $0x18] sm:$0xff]  ;;  %v199_v14 = vld [vmem:[%s436_s5 + $0x10] sm:$0xff]  ;;  %v282_v23 = vand.u32 127, %v281_v22 }
   0x4   :  { %316 = vmatpush3.msra.mxu0 %v27_v2  ;;  %322 = vmatprep.subr.mxu1 %v344_v0  ;;  %v294_v9 = vld [vmem:[%s437_s2] ss:$0 sm:$0xff]  ;;  %v198_v15 = vld [vmem:[%s436_s5 + $0x8] sm:$0xff] }
   0x5   :  { %318 = vmatmul.mubr.msk.f32.vlgmr.msra.gmra.mxu0 %vm36_vm1, %v26_v3  ;;  %328 = vmatprep.mubr.msk.f32.mxu1 %vm345_vm0, %v344_v0  ;;  %v197_v16 = vld [vmem:[%s436_s5] sm:$0xff]  ;;  %vm283_vm3 = vcmp.ge.s32.totalorder %v282_v23, 8  ;;  %vm284_vm4 = vcmp.lt.s32.totalorder %v282_v23, 16 }
   0x6   :  { %331 = vmatprep.subr.mxu0 %v344_v0  ;;  %339 = vmatprep.mubr.msk.f32.mxu0 %vm345_vm0, %v344_v0  ;;  %v296_v17 = vld [vmem:[%s438_s4] ss:$0 sm:$0xff]  ;;  %vm285_vm5 = vmand %vm283_vm3, %vm284_vm4 }
   0x7   :  { %323 = vmatpush3.msra.mxu1 %v113_v5  ;;  %332 = vmatpush3.msra.mxu0 %v200_v8  ;;  %v298_v24 = vld [vmem:[%s439_s6] ss:$0 sm:$0xff] }
   0x8   :  { %324 = vmatprep.subr.mxu1 %v344_v0  ;;  %333 = vmatprep.subr.mxu0 %v344_v0 }
   0x9   :  { %325 = vmatpush3.msra.mxu1 %v112_v6  ;;  %334 = vmatpush3.msra.mxu0 %v199_v14 }
   0xa   :  { %326 = vmatprep.subr.mxu1 %v344_v0  ;;  %335 = vmatprep.subr.mxu0 %v344_v0 }
   0xb   :  { %327 = vmatpush3.msra.mxu1 %v111_v7  ;;  %336 = vmatpush3.msra.mxu0 %v198_v15 }
   0xc   :  { %337 = vmatprep.subr.mxu0 %v344_v0 }
   0xd   :  { %338 = vmatpush3.msra.mxu0 %v197_v16 }
  0xc5   :  { %v106_v10 = vpop.f32.mrf.mxu0 }
  0xc6   :  { %v107_v11 = vadd.f32 %v294_v9, %v106_v10 }
  0xc7   :  { %v319_v12 = vpop.f32.mrf.mxu0 }
  0xc8   :  { %v110_v13 = vmax.f32 %v107_v11, 0.0 }
  0xca   :  { %329 = vmatmul.mubr.msk.f32.vlgmr.msra.gmra.mxu1 %vm122_vm2, %v110_v13 }
 0x18a   :  { %v192_v18 = vpop.f32.mrf.mxu1 }
 0x18b   :  { %v193_v19 = vadd.f32 %v296_v17, %v192_v18 }
 0x18c   :  { %v330_v20 = vpop.f32.mrf.mxu1 }
 0x18d   :  { %v196_v21 = vmax.f32 %v193_v19, 0.0 }
 0x18f   :  { %340 = vmatmul.mubr.msk.f32.vlgmr.msra.gmra.mxu0 %vm122_vm2, %v196_v21 }
 0x24f   :  { %v277_v25 = vpop.f32.mrf.mxu0 }
 0x250   :  { %v278_v26 = vadd.f32 %v298_v24, %v277_v25 }
 0x251   :  { %v341_v27 = vpop.f32.mrf.mxu0 }
 0x252   :  { %v286_v28 = vmax.f32 %v278_v26, -20.0 }
 0x254   :  { %v287_v29 = vmin.f32 %v286_v28, 2.0 }
 0x256   :  { %v288_v30 = vsel %vm285_vm5, %v287_v29, %v278_v26 }
 0x257   :  { %289 = vst [vmem:[%s440_s7] sm:$0xff] %v288_v30 }

</bundles_post_ra>
